<compile_context>
chip_gen: v7x
topology: tpu7x:2x2x1
jax: 0.10.0
libtpu: 0.0.40
codegen_flags: <defaults>
</compile_context>

<pallas_src>
import functools

import jax
import jax.numpy as jnp
from jax.experimental import pallas as pl
from jax.experimental.pallas import tpu as pltpu
import numpy as np


def _round_up(x, m):
    return (x + m - 1) // m * m


# ---------------------------------------------------------------------------
# Fast path: small channel count, lane-aligned spatial size.
# ---------------------------------------------------------------------------
def _residual_branch_kernel_small_c(w1_ref, b1_ref, w2_ref, b2_ref, alphas_ref,
                                    x_ref, o_ref):
    # SMEM: w1 (C, C), b1 (C,), w2 (R2, C), b2 (R2,), alphas (2,)
    # VMEM: x (1, C, RT, 128) dense slabs, o (1, R2, RT, 128) dense slabs
    a0 = alphas_ref[0]
    a1 = alphas_ref[1]
    c_in = x_ref.shape[1]
    c_out = o_ref.shape[1]

    # Per-channel dense (RT, 128) slabs: full 8-sublane utilisation.
    x = [x_ref[0, c].astype(jnp.float32) for c in range(c_in)]

    # Layer 1: y_o = PReLU(sum_c W1[o,c] * x_c + b1[o], a0)
    ys = []
    for o in range(c_in):
        acc = w1_ref[o, 0] * x[0] + b1_ref[o]
        for c in range(1, c_in):
            acc = acc + w1_ref[o, c] * x[c]
        ys.append(jnp.where(acc > 0, acc, a0 * acc))

    # Layer 2: z_o = PReLU(sum_c W2[o,c] * y_c + b2[o], a1)
    for o in range(c_out):
        acc = w2_ref[o, 0] * ys[0] + b2_ref[o]
        for c in range(1, c_in):
            acc = acc + w2_ref[o, c] * ys[c]
        z = jnp.where(acc > 0, acc, a1 * acc)
        o_ref[0, o] = z.astype(o_ref.dtype)


def _pointwise_convs_small_c(x4, w1, b1, w2, b2, alphas, *,
                             vmem_budget_bytes=8 << 20, out_dtype=None):
    """x4: (B, C, rows, 128) channels-first, lane-dense -> (B, R2, rows, 128)."""
    B, C, rows, L = x4.shape
    R2 = w2.shape[0]
    out_dtype = out_dtype or x4.dtype
    itemsize = max(jnp.dtype(x4.dtype).itemsize, jnp.dtype(out_dtype).itemsize)

    # Bytes per spatial row of 128 lanes, double-buffered in + out tiles.
    per_row = (C + R2) * L * itemsize * 2
    rt = max(8, (vmem_budget_bytes // per_row) // 8 * 8)
    if rt >= rows:
        rt = rows                      # full dim is always a legal block size
    grid = (B, pl.cdiv(rows, rt))      # boundary block is clipped by Pallas

    return pl.pallas_call(
        _residual_branch_kernel_small_c,
        out_shape=jax.ShapeDtypeStruct((B, R2, rows, L), out_dtype),
        grid=grid,
        in_specs=[
            pl.BlockSpec(memory_space=pltpu.MemorySpace.SMEM),   # W1
            pl.BlockSpec(memory_space=pltpu.MemorySpace.SMEM),   # b1
            pl.BlockSpec(memory_space=pltpu.MemorySpace.SMEM),   # W2
            pl.BlockSpec(memory_space=pltpu.MemorySpace.SMEM),   # b2
            pl.BlockSpec(memory_space=pltpu.MemorySpace.SMEM),   # PReLU alphas
            pl.BlockSpec((1, C, rt, L), lambda b, s: (b, 0, s, 0)),
        ],
        out_specs=pl.BlockSpec((1, R2, rt, L), lambda b, s: (b, 0, s, 0)),
        compiler_params=pltpu.CompilerParams(
            dimension_semantics=("parallel", "parallel")),
    )(w1, b1, w2, b2, alphas, x4)


# ---------------------------------------------------------------------------
# Fallback path: generic channel count / lane-unaligned spatial size.
# ---------------------------------------------------------------------------
def _residual_branch_kernel(alphas_ref, x_ref, w1_ref, b1_ref, w2_ref, b2_ref,
                            o_ref):
    # alphas_ref: SMEM (2,)                x_ref : (1, C, TS)   lane-dense
    # w1_ref: (C, C)    b1_ref: (C, 1)     w2_ref: (R2, C)   b2_ref: (R2, 1)
    # o_ref : (1, R2, TS)                  lane-dense output
    x = x_ref[0].astype(jnp.float32)           # (C, TS)
    w1 = w1_ref[...].astype(jnp.float32)       # (C, C)   (out, in) -- no .T
    w2 = w2_ref[...].astype(jnp.float32)       # (R2, C)  (out, in) -- no .T
    b1 = b1_ref[...].astype(jnp.float32)       # (C, 1)
    b2 = b2_ref[...].astype(jnp.float32)       # (R2, 1)
    a0 = alphas_ref[0]                         # SMEM scalar reads
    a1 = alphas_ref[1]

    c_in = x.shape[0]
    ts = x.shape[1]

    def channel_mix(w, v, b):
        # (Cout, Cin) @ (Cin, TS) + (Cout, 1) -> (Cout, TS)
        if c_in <= 8:
            # Tiny contraction: unrolled VPU broadcast-FMAs, skip the MXU.
            acc = jnp.broadcast_to(b, (w.shape[0], ts))
            for c in range(c_in):
                acc = acc + w[:, c:c + 1] * v[c:c + 1, :]
            return acc
        return jnp.dot(w, v, preferred_element_type=jnp.float32) + b

    y = channel_mix(w1, x, b1)
    y = jnp.where(y > 0, y, a0 * y)            # PReLU (shared scalar alpha)
    z = channel_mix(w2, y, b2)
    z = jnp.where(z > 0, z, a1 * z)            # PReLU

    o_ref[0] = z.astype(o_ref.dtype)


def _pointwise_convs_pallas(x3, w1, b1, w2, b2, alphas, *,
                            vmem_budget_bytes=8 << 20, out_dtype=None):
    """x3: (B, C, S) channels-first -> (B, R2, S)."""
    B, C, S = x3.shape
    R2 = w2.shape[0]
    out_dtype = out_dtype or x3.dtype
    itemsize = max(jnp.dtype(x3.dtype).itemsize, jnp.dtype(out_dtype).itemsize)

    # Adaptive lane-dense spatial tile (double-buffered in + out within budget),
    # then re-balance so padding never exceeds one 128-lane group per tile.
    per_elem = (C + R2) * itemsize * 2
    ts = max(128, (vmem_budget_bytes // per_elem) // 128 * 128)
    ts = min(ts, _round_up(S, 128))
    n_tiles = -(-S // ts)
    ts = _round_up(-(-S // n_tiles), 128)
    s_pad = n_tiles * ts
    if s_pad != S:
        x3 = jnp.pad(x3, ((0, 0), (0, 0), (0, s_pad - S)))
    grid = (B, n_tiles)

    out = pl.pallas_call(
        _residual_branch_kernel,
        out_shape=jax.ShapeDtypeStruct((B, R2, s_pad), out_dtype),
        grid=grid,
        in_specs=[
            pl.BlockSpec(memory_space=pltpu.MemorySpace.SMEM),   # PReLU alphas
            pl.BlockSpec((1, C, ts), lambda b, s: (b, 0, s)),    # x tile
            pl.BlockSpec((C, C), lambda b, s: (0, 0)),           # W1 (resident)
            pl.BlockSpec((C, 1), lambda b, s: (0, 0)),           # b1
            pl.BlockSpec((R2, C), lambda b, s: (0, 0)),          # W2 (resident)
            pl.BlockSpec((R2, 1), lambda b, s: (0, 0)),          # b2
        ],
        out_specs=pl.BlockSpec((1, R2, ts), lambda b, s: (b, 0, s)),
        compiler_params=pltpu.CompilerParams(
            dimension_semantics=("parallel", "parallel")),
    )(alphas, x3, w1, b1, w2, b2)

    if s_pad != S:
        out = out[:, :, :S]
    return out


# ---------------------------------------------------------------------------
# Full forward pass.
# ---------------------------------------------------------------------------
def residual_branch_forward(x, params, sr_rate, *, vmem_budget_bytes=8 << 20):
    """x: (B, C, HV, WV, H, W) float32 -> (B, 1, HV, WV, H*sr, W*sr)."""
    w1, b1, a0, w2, b2, a1 = params
    B, C, HV, WV, H, W = x.shape
    r = sr_rate
    r2 = r * r
    S = HV * WV * H * W

    # Channels-first flatten: pure reshape, no transpose / extra HBM pass.
    x3 = x.reshape(B, C, S)
    alphas = jnp.concatenate([jnp.ravel(jnp.asarray(a0, jnp.float32)),
                              jnp.ravel(jnp.asarray(a1, jnp.float32))])
    w1f = w1.astype(jnp.float32)
    b1f = b1.astype(jnp.float32)
    w2f = w2.astype(jnp.float32)
    b2f = b2.astype(jnp.float32)

    if C <= 8 and S % 128 == 0:
        # Fast path: dense (rows, 128) per-channel slabs, SMEM scalar weights.
        x4 = x3.reshape(B, C, S // 128, 128)               # pure reshape
        z4 = _pointwise_convs_small_c(x4, w1f, b1f, w2f, b2f, alphas,
                                      vmem_budget_bytes=vmem_budget_bytes)
        z3 = z4.reshape(B, r2, S)
    else:
        z3 = _pointwise_convs_pallas(
            x3, w1f, b1f.reshape(C, 1), w2f, b2f.reshape(r2, 1), alphas,
            vmem_budget_bytes=vmem_budget_bytes)           # (B, r2, S)

    # Pixel shuffle + permutes (pure data movement, JAX glue):
    #   z3[b, i*r + j, (hv, wv, h, w)] -> out[b, 0, hv, wv, h*r+i, w*r+j]
    # TODO(synk): pixel-shuffle / permutes left to XLA (layout-only, no FLOPs).
    z = z3.reshape(B, r, r, HV, WV, H, W)
    z = jnp.transpose(z, (0, 3, 4, 5, 1, 6, 2))            # (B, HV, WV, H, i, W, j)
    z = z.reshape(B, HV, WV, H * r, W * r)
    return z[:, None]                                      # (B, 1, HV, WV, Hr, Wr)


def init_params(key, channel_num, sr_rate):
    """kaiming_uniform_(a=0.25, fan_in, leaky_relu), zero bias, PReLU=0.25."""
    k1, k2 = jax.random.split(key)
    a = 0.25
    gain = np.sqrt(2.0 / (1.0 + a * a))

    fan_in1 = channel_num                       # in_channels * 1*1*1
    bound1 = gain * np.sqrt(3.0 / fan_in1)
    w1 = jax.random.uniform(k1, (channel_num, channel_num), jnp.float32,
                            -bound1, bound1)
    b1 = jnp.zeros((channel_num,), jnp.float32)

    fan_in2 = channel_num
    bound2 = gain * np.sqrt(3.0 / fan_in2)
    w2 = jax.random.uniform(k2, (sr_rate * sr_rate, channel_num), jnp.float32,
                            -bound2, bound2)
    b2 = jnp.zeros((sr_rate * sr_rate,), jnp.float32)

    a0 = jnp.asarray(0.25, jnp.float32)
    a1 = jnp.asarray(0.25, jnp.float32)
    return (w1, b1, a0, w2, b2, a1)


def _reference_forward(x, params, sr_rate):
    """Pure-jnp reference mirroring the PyTorch semantics."""
    w1, b1, a0, w2, b2, a1 = params
    B, C, HV, WV, H, W = x.shape
    r = sr_rate

    def prelu(v, alpha):
        return jnp.where(v > 0, v, alpha * v)

    y = jnp.einsum('bcvhw,oc->bovhw', x.reshape(B, C, HV * WV, H, W), w1) \
        + b1[None, :, None, None, None]
    y = prelu(y, a0)
    z = jnp.einsum('bcvhw,oc->bovhw', y, w2) + b2[None, :, None, None, None]
    z = prelu(z, a1)
    z = jnp.transpose(z, (0, 2, 1, 3, 4)).reshape(B * HV * WV, r * r, H, W)
    z = z.reshape(B * HV * WV, 1, r, r, H, W)
    z = jnp.transpose(z, (0, 1, 4, 2, 5, 3)).reshape(B * HV * WV, 1, H * r, W * r)
    z = z.reshape(B, HV, WV, 1, H * r, W * r)
    return jnp.transpose(z, (0, 3, 1, 2, 4, 5))


if __name__ == "__main__":
    key = jax.random.PRNGKey(0)
    kx, kp, kx2 = jax.random.split(key, 3)

    # Case 1 (fast path): batch=2, channels=4, 2x2 views, 8x8 spatial, sr=2.
    B, C, HV, WV, H, W = 2, 4, 2, 2, 8, 8
    sr_rate = 2
    x = jax.random.normal(kx, (B, C, HV, WV, H, W), jnp.float32)
    params = init_params(kp, C, sr_rate)

    fwd = jax.jit(functools.partial(residual_branch_forward, sr_rate=sr_rate))
    out = fwd(x, params)
    jax.block_until_ready(out)
    ref = _reference_forward(x, params, sr_rate)
    assert out.shape == (B, 1, HV, WV, H * sr_rate, W * sr_rate), out.shape
    np.testing.assert_allclose(np.asarray(out), np.asarray(ref),
                               rtol=1e-5, atol=1e-5)

    # Case 2 (fallback path): spatial size not a multiple of 128.
    H2 = W2 = 6
    x2 = jax.random.normal(kx2, (B, C, HV, WV, H2, W2), jnp.float32)
    out2 = fwd(x2, params)
    jax.block_until_ready(out2)
    ref2 = _reference_forward(x2, params, sr_rate)
    assert out2.shape == (B, 1, HV, WV, H2 * sr_rate, W2 * sr_rate), out2.shape
    np.testing.assert_allclose(np.asarray(out2), np.asarray(ref2),
                               rtol=1e-5, atol=1e-5)

    print("KERNEL_OK")
</pallas_src>

<mosaic_0001>
module attributes {stable_mosaic.version = 11 : i64} {
  func.func @_residual_branch_kernel_small_c(%arg0: i32, %arg1: i32, %arg2: memref<4x4xf32, #tpu.memory_space<smem>>, %arg3: memref<4xf32, #tpu.memory_space<smem>>, %arg4: memref<4x4xf32, #tpu.memory_space<smem>>, %arg5: memref<4xf32, #tpu.memory_space<smem>>, %arg6: memref<2xf32, #tpu.memory_space<smem>>, %arg7: memref<1x4x2x128xf32, #tpu.memory_space<vmem>>, %arg8: memref<1x4x2x128xf32, #tpu.memory_space<vmem>>) attributes {dimension_semantics = [#tpu.dimension_semantics<parallel>, #tpu.dimension_semantics<parallel>], iteration_bounds = array<i64: 2, 1>, scalar_prefetch = 0 : i64, scratch_operands = 0 : i64, tpu.core_type = #tpu.core_type<tc>, window_params = [{transform_indices = @transform_0, window_bounds = array<i64: 4, 4>}, {transform_indices = @transform_1, window_bounds = array<i64: 4>}, {transform_indices = @transform_2, window_bounds = array<i64: 4, 4>}, {transform_indices = @transform_3, window_bounds = array<i64: 4>}, {transform_indices = @transform_4, window_bounds = array<i64: 2>}, {transform_indices = @transform_5, window_bounds = array<i64: 1, 4, 2, 128>}, {transform_indices = @transform_6, window_bounds = array<i64: 1, 4, 2, 128>}]} {
    %c0 = arith.constant 0 : index
    %0 = memref.load %arg6[%c0] : memref<2xf32, #tpu.memory_space<smem>>
    %c1 = arith.constant 1 : index
    %1 = memref.load %arg6[%c1] : memref<2xf32, #tpu.memory_space<smem>>
    %c0_0 = arith.constant 0 : index
    %c0_1 = arith.constant 0 : index
    %c0_2 = arith.constant 0 : index
    %c0_3 = arith.constant 0 : index
    %2 = vector.load %arg7[%c0_0, %c0_1, %c0_2, %c0_3] : memref<1x4x2x128xf32, #tpu.memory_space<vmem>>, vector<1x1x2x128xf32>
    %3 = vector.shape_cast %2 : vector<1x1x2x128xf32> to vector<2x128xf32>
    %c0_4 = arith.constant 0 : index
    %c1_5 = arith.constant 1 : index
    %c0_6 = arith.constant 0 : index
    %c0_7 = arith.constant 0 : index
    %4 = vector.load %arg7[%c0_4, %c1_5, %c0_6, %c0_7] : memref<1x4x2x128xf32, #tpu.memory_space<vmem>>, vector<1x1x2x128xf32>
    %5 = vector.shape_cast %4 : vector<1x1x2x128xf32> to vector<2x128xf32>
    %c0_8 = arith.constant 0 : index
    %c2 = arith.constant 2 : index
    %c0_9 = arith.constant 0 : index
    %c0_10 = arith.constant 0 : index
    %6 = vector.load %arg7[%c0_8, %c2, %c0_9, %c0_10] : memref<1x4x2x128xf32, #tpu.memory_space<vmem>>, vector<1x1x2x128xf32>
    %7 = vector.shape_cast %6 : vector<1x1x2x128xf32> to vector<2x128xf32>
    %c0_11 = arith.constant 0 : index
    %c3 = arith.constant 3 : index
    %c0_12 = arith.constant 0 : index
    %c0_13 = arith.constant 0 : index
    %8 = vector.load %arg7[%c0_11, %c3, %c0_12, %c0_13] : memref<1x4x2x128xf32, #tpu.memory_space<vmem>>, vector<1x1x2x128xf32>
    %9 = vector.shape_cast %8 : vector<1x1x2x128xf32> to vector<2x128xf32>
    %c0_14 = arith.constant 0 : index
    %c0_15 = arith.constant 0 : index
    %10 = memref.load %arg2[%c0_14, %c0_15] : memref<4x4xf32, #tpu.memory_space<smem>>
    %11 = vector.broadcast %10 : f32 to vector<2x128xf32>
    %12 = arith.mulf %11, %3 : vector<2x128xf32>
    %c0_16 = arith.constant 0 : index
    %13 = memref.load %arg3[%c0_16] : memref<4xf32, #tpu.memory_space<smem>>
    %14 = vector.broadcast %13 : f32 to vector<2x128xf32>
    %15 = arith.addf %12, %14 : vector<2x128xf32>
    %c0_17 = arith.constant 0 : index
    %c1_18 = arith.constant 1 : index
    %16 = memref.load %arg2[%c0_17, %c1_18] : memref<4x4xf32, #tpu.memory_space<smem>>
    %17 = vector.broadcast %16 : f32 to vector<2x128xf32>
    %18 = arith.mulf %17, %5 : vector<2x128xf32>
    %19 = arith.addf %15, %18 : vector<2x128xf32>
    %c0_19 = arith.constant 0 : index
    %c2_20 = arith.constant 2 : index
    %20 = memref.load %arg2[%c0_19, %c2_20] : memref<4x4xf32, #tpu.memory_space<smem>>
    %21 = vector.broadcast %20 : f32 to vector<2x128xf32>
    %22 = arith.mulf %21, %7 : vector<2x128xf32>
    %23 = arith.addf %19, %22 : vector<2x128xf32>
    %c0_21 = arith.constant 0 : index
    %c3_22 = arith.constant 3 : index
    %24 = memref.load %arg2[%c0_21, %c3_22] : memref<4x4xf32, #tpu.memory_space<smem>>
    %25 = vector.broadcast %24 : f32 to vector<2x128xf32>
    %26 = arith.mulf %25, %9 : vector<2x128xf32>
    %27 = arith.addf %23, %26 : vector<2x128xf32>
    %cst = arith.constant 0.000000e+00 : f32
    %28 = vector.broadcast %cst : f32 to vector<2x128xf32>
    %29 = arith.cmpf ogt, %27, %28 : vector<2x128xf32>
    %30 = vector.broadcast %0 : f32 to vector<2x128xf32>
    %31 = arith.mulf %30, %27 : vector<2x128xf32>
    %32 = arith.select %29, %27, %31 : vector<2x128xi1>, vector<2x128xf32>
    %c1_23 = arith.constant 1 : index
    %c0_24 = arith.constant 0 : index
    %33 = memref.load %arg2[%c1_23, %c0_24] : memref<4x4xf32, #tpu.memory_space<smem>>
    %34 = vector.broadcast %33 : f32 to vector<2x128xf32>
    %35 = arith.mulf %34, %3 : vector<2x128xf32>
    %c1_25 = arith.constant 1 : index
    %36 = memref.load %arg3[%c1_25] : memref<4xf32, #tpu.memory_space<smem>>
    %37 = vector.broadcast %36 : f32 to vector<2x128xf32>
    %38 = arith.addf %35, %37 : vector<2x128xf32>
    %c1_26 = arith.constant 1 : index
    %c1_27 = arith.constant 1 : index
    %39 = memref.load %arg2[%c1_26, %c1_27] : memref<4x4xf32, #tpu.memory_space<smem>>
    %40 = vector.broadcast %39 : f32 to vector<2x128xf32>
    %41 = arith.mulf %40, %5 : vector<2x128xf32>
    %42 = arith.addf %38, %41 : vector<2x128xf32>
    %c1_28 = arith.constant 1 : index
    %c2_29 = arith.constant 2 : index
    %43 = memref.load %arg2[%c1_28, %c2_29] : memref<4x4xf32, #tpu.memory_space<smem>>
    %44 = vector.broadcast %43 : f32 to vector<2x128xf32>
    %45 = arith.mulf %44, %7 : vector<2x128xf32>
    %46 = arith.addf %42, %45 : vector<2x128xf32>
    %c1_30 = arith.constant 1 : index
    %c3_31 = arith.constant 3 : index
    %47 = memref.load %arg2[%c1_30, %c3_31] : memref<4x4xf32, #tpu.memory_space<smem>>
    %48 = vector.broadcast %47 : f32 to vector<2x128xf32>
    %49 = arith.mulf %48, %9 : vector<2x128xf32>
    %50 = arith.addf %46, %49 : vector<2x128xf32>
    %cst_32 = arith.constant 0.000000e+00 : f32
    %51 = vector.broadcast %cst_32 : f32 to vector<2x128xf32>
    %52 = arith.cmpf ogt, %50, %51 : vector<2x128xf32>
    %53 = vector.broadcast %0 : f32 to vector<2x128xf32>
    %54 = arith.mulf %53, %50 : vector<2x128xf32>
    %55 = arith.select %52, %50, %54 : vector<2x128xi1>, vector<2x128xf32>
    %c2_33 = arith.constant 2 : index
    %c0_34 = arith.constant 0 : index
    %56 = memref.load %arg2[%c2_33, %c0_34] : memref<4x4xf32, #tpu.memory_space<smem>>
    %57 = vector.broadcast %56 : f32 to vector<2x128xf32>
    %58 = arith.mulf %57, %3 : vector<2x128xf32>
    %c2_35 = arith.constant 2 : index
    %59 = memref.load %arg3[%c2_35] : memref<4xf32, #tpu.memory_space<smem>>
    %60 = vector.broadcast %59 : f32 to vector<2x128xf32>
    %61 = arith.addf %58, %60 : vector<2x128xf32>
    %c2_36 = arith.constant 2 : index
    %c1_37 = arith.constant 1 : index
    %62 = memref.load %arg2[%c2_36, %c1_37] : memref<4x4xf32, #tpu.memory_space<smem>>
    %63 = vector.broadcast %62 : f32 to vector<2x128xf32>
    %64 = arith.mulf %63, %5 : vector<2x128xf32>
    %65 = arith.addf %61, %64 : vector<2x128xf32>
    %c2_38 = arith.constant 2 : index
    %c2_39 = arith.constant 2 : index
    %66 = memref.load %arg2[%c2_38, %c2_39] : memref<4x4xf32, #tpu.memory_space<smem>>
    %67 = vector.broadcast %66 : f32 to vector<2x128xf32>
    %68 = arith.mulf %67, %7 : vector<2x128xf32>
    %69 = arith.addf %65, %68 : vector<2x128xf32>
    %c2_40 = arith.constant 2 : index
    %c3_41 = arith.constant 3 : index
    %70 = memref.load %arg2[%c2_40, %c3_41] : memref<4x4xf32, #tpu.memory_space<smem>>
    %71 = vector.broadcast %70 : f32 to vector<2x128xf32>
    %72 = arith.mulf %71, %9 : vector<2x128xf32>
    %73 = arith.addf %69, %72 : vector<2x128xf32>
    %cst_42 = arith.constant 0.000000e+00 : f32
    %74 = vector.broadcast %cst_42 : f32 to vector<2x128xf32>
    %75 = arith.cmpf ogt, %73, %74 : vector<2x128xf32>
    %76 = vector.broadcast %0 : f32 to vector<2x128xf32>
    %77 = arith.mulf %76, %73 : vector<2x128xf32>
    %78 = arith.select %75, %73, %77 : vector<2x128xi1>, vector<2x128xf32>
    %c3_43 = arith.constant 3 : index
    %c0_44 = arith.constant 0 : index
    %79 = memref.load %arg2[%c3_43, %c0_44] : memref<4x4xf32, #tpu.memory_space<smem>>
    %80 = vector.broadcast %79 : f32 to vector<2x128xf32>
    %81 = arith.mulf %80, %3 : vector<2x128xf32>
    %c3_45 = arith.constant 3 : index
    %82 = memref.load %arg3[%c3_45] : memref<4xf32, #tpu.memory_space<smem>>
    %83 = vector.broadcast %82 : f32 to vector<2x128xf32>
    %84 = arith.addf %81, %83 : vector<2x128xf32>
    %c3_46 = arith.constant 3 : index
    %c1_47 = arith.constant 1 : index
    %85 = memref.load %arg2[%c3_46, %c1_47] : memref<4x4xf32, #tpu.memory_space<smem>>
    %86 = vector.broadcast %85 : f32 to vector<2x128xf32>
    %87 = arith.mulf %86, %5 : vector<2x128xf32>
    %88 = arith.addf %84, %87 : vector<2x128xf32>
    %c3_48 = arith.constant 3 : index
    %c2_49 = arith.constant 2 : index
    %89 = memref.load %arg2[%c3_48, %c2_49] : memref<4x4xf32, #tpu.memory_space<smem>>
    %90 = vector.broadcast %89 : f32 to vector<2x128xf32>
    %91 = arith.mulf %90, %7 : vector<2x128xf32>
    %92 = arith.addf %88, %91 : vector<2x128xf32>
    %c3_50 = arith.constant 3 : index
    %c3_51 = arith.constant 3 : index
    %93 = memref.load %arg2[%c3_50, %c3_51] : memref<4x4xf32, #tpu.memory_space<smem>>
    %94 = vector.broadcast %93 : f32 to vector<2x128xf32>
    %95 = arith.mulf %94, %9 : vector<2x128xf32>
    %96 = arith.addf %92, %95 : vector<2x128xf32>
    %cst_52 = arith.constant 0.000000e+00 : f32
    %97 = vector.broadcast %cst_52 : f32 to vector<2x128xf32>
    %98 = arith.cmpf ogt, %96, %97 : vector<2x128xf32>
    %99 = vector.broadcast %0 : f32 to vector<2x128xf32>
    %100 = arith.mulf %99, %96 : vector<2x128xf32>
    %101 = arith.select %98, %96, %100 : vector<2x128xi1>, vector<2x128xf32>
    %c0_53 = arith.constant 0 : index
    %c0_54 = arith.constant 0 : index
    %102 = memref.load %arg4[%c0_53, %c0_54] : memref<4x4xf32, #tpu.memory_space<smem>>
    %103 = vector.broadcast %102 : f32 to vector<2x128xf32>
    %104 = arith.mulf %103, %32 : vector<2x128xf32>
    %c0_55 = arith.constant 0 : index
    %105 = memref.load %arg5[%c0_55] : memref<4xf32, #tpu.memory_space<smem>>
    %106 = vector.broadcast %105 : f32 to vector<2x128xf32>
    %107 = arith.addf %104, %106 : vector<2x128xf32>
    %c0_56 = arith.constant 0 : index
    %c1_57 = arith.constant 1 : index
    %108 = memref.load %arg4[%c0_56, %c1_57] : memref<4x4xf32, #tpu.memory_space<smem>>
    %109 = vector.broadcast %108 : f32 to vector<2x128xf32>
    %110 = arith.mulf %109, %55 : vector<2x128xf32>
    %111 = arith.addf %107, %110 : vector<2x128xf32>
    %c0_58 = arith.constant 0 : index
    %c2_59 = arith.constant 2 : index
    %112 = memref.load %arg4[%c0_58, %c2_59] : memref<4x4xf32, #tpu.memory_space<smem>>
    %113 = vector.broadcast %112 : f32 to vector<2x128xf32>
    %114 = arith.mulf %113, %78 : vector<2x128xf32>
    %115 = arith.addf %111, %114 : vector<2x128xf32>
    %c0_60 = arith.constant 0 : index
    %c3_61 = arith.constant 3 : index
    %116 = memref.load %arg4[%c0_60, %c3_61] : memref<4x4xf32, #tpu.memory_space<smem>>
    %117 = vector.broadcast %116 : f32 to vector<2x128xf32>
    %118 = arith.mulf %117, %101 : vector<2x128xf32>
    %119 = arith.addf %115, %118 : vector<2x128xf32>
    %cst_62 = arith.constant 0.000000e+00 : f32
    %120 = vector.broadcast %cst_62 : f32 to vector<2x128xf32>
    %121 = arith.cmpf ogt, %119, %120 : vector<2x128xf32>
    %122 = vector.broadcast %1 : f32 to vector<2x128xf32>
    %123 = arith.mulf %122, %119 : vector<2x128xf32>
    %124 = arith.select %121, %119, %123 : vector<2x128xi1>, vector<2x128xf32>
    %c0_63 = arith.constant 0 : index
    %c0_64 = arith.constant 0 : index
    %c0_65 = arith.constant 0 : index
    %c0_66 = arith.constant 0 : index
    %125 = vector.load %arg8[%c0_63, %c0_64, %c0_65, %c0_66] : memref<1x4x2x128xf32, #tpu.memory_space<vmem>>, vector<1x1x2x128xf32>
    %126 = vector.shape_cast %125 : vector<1x1x2x128xf32> to vector<2x128xf32>
    %127 = vector.shape_cast %124 : vector<2x128xf32> to vector<1x1x2x128xf32>
    tpu.vector_store %arg8[%c0_63, %c0_64, %c0_65, %c0_66], %127 {strides = array<i32>} : memref<1x4x2x128xf32, #tpu.memory_space<vmem>>, vector<1x1x2x128xf32>,
    %c1_67 = arith.constant 1 : index
    %c0_68 = arith.constant 0 : index
    %128 = memref.load %arg4[%c1_67, %c0_68] : memref<4x4xf32, #tpu.memory_space<smem>>
    %129 = vector.broadcast %128 : f32 to vector<2x128xf32>
    %130 = arith.mulf %129, %32 : vector<2x128xf32>
    %c1_69 = arith.constant 1 : index
    %131 = memref.load %arg5[%c1_69] : memref<4xf32, #tpu.memory_space<smem>>
    %132 = vector.broadcast %131 : f32 to vector<2x128xf32>
    %133 = arith.addf %130, %132 : vector<2x128xf32>
    %c1_70 = arith.constant 1 : index
    %c1_71 = arith.constant 1 : index
    %134 = memref.load %arg4[%c1_70, %c1_71] : memref<4x4xf32, #tpu.memory_space<smem>>
    %135 = vector.broadcast %134 : f32 to vector<2x128xf32>
    %136 = arith.mulf %135, %55 : vector<2x128xf32>
    %137 = arith.addf %133, %136 : vector<2x128xf32>
    %c1_72 = arith.constant 1 : index
    %c2_73 = arith.constant 2 : index
    %138 = memref.load %arg4[%c1_72, %c2_73] : memref<4x4xf32, #tpu.memory_space<smem>>
    %139 = vector.broadcast %138 : f32 to vector<2x128xf32>
    %140 = arith.mulf %139, %78 : vector<2x128xf32>
    %141 = arith.addf %137, %140 : vector<2x128xf32>
    %c1_74 = arith.constant 1 : index
    %c3_75 = arith.constant 3 : index
    %142 = memref.load %arg4[%c1_74, %c3_75] : memref<4x4xf32, #tpu.memory_space<smem>>
    %143 = vector.broadcast %142 : f32 to vector<2x128xf32>
    %144 = arith.mulf %143, %101 : vector<2x128xf32>
    %145 = arith.addf %141, %144 : vector<2x128xf32>
    %cst_76 = arith.constant 0.000000e+00 : f32
    %146 = vector.broadcast %cst_76 : f32 to vector<2x128xf32>
    %147 = arith.cmpf ogt, %145, %146 : vector<2x128xf32>
    %148 = vector.broadcast %1 : f32 to vector<2x128xf32>
    %149 = arith.mulf %148, %145 : vector<2x128xf32>
    %150 = arith.select %147, %145, %149 : vector<2x128xi1>, vector<2x128xf32>
    %c0_77 = arith.constant 0 : index
    %c1_78 = arith.constant 1 : index
    %c0_79 = arith.constant 0 : index
    %c0_80 = arith.constant 0 : index
    %151 = vector.load %arg8[%c0_77, %c1_78, %c0_79, %c0_80] : memref<1x4x2x128xf32, #tpu.memory_space<vmem>>, vector<1x1x2x128xf32>
    %152 = vector.shape_cast %151 : vector<1x1x2x128xf32> to vector<2x128xf32>
    %153 = vector.shape_cast %150 : vector<2x128xf32> to vector<1x1x2x128xf32>
    tpu.vector_store %arg8[%c0_77, %c1_78, %c0_79, %c0_80], %153 {strides = array<i32>} : memref<1x4x2x128xf32, #tpu.memory_space<vmem>>, vector<1x1x2x128xf32>,
    %c2_81 = arith.constant 2 : index
    %c0_82 = arith.constant 0 : index
    %154 = memref.load %arg4[%c2_81, %c0_82] : memref<4x4xf32, #tpu.memory_space<smem>>
    %155 = vector.broadcast %154 : f32 to vector<2x128xf32>
    %156 = arith.mulf %155, %32 : vector<2x128xf32>
    %c2_83 = arith.constant 2 : index
    %157 = memref.load %arg5[%c2_83] : memref<4xf32, #tpu.memory_space<smem>>
    %158 = vector.broadcast %157 : f32 to vector<2x128xf32>
    %159 = arith.addf %156, %158 : vector<2x128xf32>
    %c2_84 = arith.constant 2 : index
    %c1_85 = arith.constant 1 : index
    %160 = memref.load %arg4[%c2_84, %c1_85] : memref<4x4xf32, #tpu.memory_space<smem>>
    %161 = vector.broadcast %160 : f32 to vector<2x128xf32>
    %162 = arith.mulf %161, %55 : vector<2x128xf32>
    %163 = arith.addf %159, %162 : vector<2x128xf32>
    %c2_86 = arith.constant 2 : index
    %c2_87 = arith.constant 2 : index
    %164 = memref.load %arg4[%c2_86, %c2_87] : memref<4x4xf32, #tpu.memory_space<smem>>
    %165 = vector.broadcast %164 : f32 to vector<2x128xf32>
    %166 = arith.mulf %165, %78 : vector<2x128xf32>
    %167 = arith.addf %163, %166 : vector<2x128xf32>
    %c2_88 = arith.constant 2 : index
    %c3_89 = arith.constant 3 : index
    %168 = memref.load %arg4[%c2_88, %c3_89] : memref<4x4xf32, #tpu.memory_space<smem>>
    %169 = vector.broadcast %168 : f32 to vector<2x128xf32>
    %170 = arith.mulf %169, %101 : vector<2x128xf32>
    %171 = arith.addf %167, %170 : vector<2x128xf32>
    %cst_90 = arith.constant 0.000000e+00 : f32
    %172 = vector.broadcast %cst_90 : f32 to vector<2x128xf32>
    %173 = arith.cmpf ogt, %171, %172 : vector<2x128xf32>
    %174 = vector.broadcast %1 : f32 to vector<2x128xf32>
    %175 = arith.mulf %174, %171 : vector<2x128xf32>
    %176 = arith.select %173, %171, %175 : vector<2x128xi1>, vector<2x128xf32>
    %c0_91 = arith.constant 0 : index
    %c2_92 = arith.constant 2 : index
    %c0_93 = arith.constant 0 : index
    %c0_94 = arith.constant 0 : index
    %177 = vector.load %arg8[%c0_91, %c2_92, %c0_93, %c0_94] : memref<1x4x2x128xf32, #tpu.memory_space<vmem>>, vector<1x1x2x128xf32>
    %178 = vector.shape_cast %177 : vector<1x1x2x128xf32> to vector<2x128xf32>
    %179 = vector.shape_cast %176 : vector<2x128xf32> to vector<1x1x2x128xf32>
    tpu.vector_store %arg8[%c0_91, %c2_92, %c0_93, %c0_94], %179 {strides = array<i32>} : memref<1x4x2x128xf32, #tpu.memory_space<vmem>>, vector<1x1x2x128xf32>,
    %c3_95 = arith.constant 3 : index
    %c0_96 = arith.constant 0 : index
    %180 = memref.load %arg4[%c3_95, %c0_96] : memref<4x4xf32, #tpu.memory_space<smem>>
    %181 = vector.broadcast %180 : f32 to vector<2x128xf32>
    %182 = arith.mulf %181, %32 : vector<2x128xf32>
    %c3_97 = arith.constant 3 : index
    %183 = memref.load %arg5[%c3_97] : memref<4xf32, #tpu.memory_space<smem>>
    %184 = vector.broadcast %183 : f32 to vector<2x128xf32>
    %185 = arith.addf %182, %184 : vector<2x128xf32>
    %c3_98 = arith.constant 3 : index
    %c1_99 = arith.constant 1 : index
    %186 = memref.load %arg4[%c3_98, %c1_99] : memref<4x4xf32, #tpu.memory_space<smem>>
    %187 = vector.broadcast %186 : f32 to vector<2x128xf32>
    %188 = arith.mulf %187, %55 : vector<2x128xf32>
    %189 = arith.addf %185, %188 : vector<2x128xf32>
    %c3_100 = arith.constant 3 : index
    %c2_101 = arith.constant 2 : index
    %190 = memref.load %arg4[%c3_100, %c2_101] : memref<4x4xf32, #tpu.memory_space<smem>>
    %191 = vector.broadcast %190 : f32 to vector<2x128xf32>
    %192 = arith.mulf %191, %78 : vector<2x128xf32>
    %193 = arith.addf %189, %192 : vector<2x128xf32>
    %c3_102 = arith.constant 3 : index
    %c3_103 = arith.constant 3 : index
    %194 = memref.load %arg4[%c3_102, %c3_103] : memref<4x4xf32, #tpu.memory_space<smem>>
    %195 = vector.broadcast %194 : f32 to vector<2x128xf32>
    %196 = arith.mulf %195, %101 : vector<2x128xf32>
    %197 = arith.addf %193, %196 : vector<2x128xf32>
    %cst_104 = arith.constant 0.000000e+00 : f32
    %198 = vector.broadcast %cst_104 : f32 to vector<2x128xf32>
    %199 = arith.cmpf ogt, %197, %198 : vector<2x128xf32>
    %200 = vector.broadcast %1 : f32 to vector<2x128xf32>
    %201 = arith.mulf %200, %197 : vector<2x128xf32>
    %202 = arith.select %199, %197, %201 : vector<2x128xi1>, vector<2x128xf32>
    %c0_105 = arith.constant 0 : index
    %c3_106 = arith.constant 3 : index
    %c0_107 = arith.constant 0 : index
    %c0_108 = arith.constant 0 : index
    %203 = vector.load %arg8[%c0_105, %c3_106, %c0_107, %c0_108] : memref<1x4x2x128xf32, #tpu.memory_space<vmem>>, vector<1x1x2x128xf32>
    %204 = vector.shape_cast %203 : vector<1x1x2x128xf32> to vector<2x128xf32>
    %205 = vector.shape_cast %202 : vector<2x128xf32> to vector<1x1x2x128xf32>
    tpu.vector_store %arg8[%c0_105, %c3_106, %c0_107, %c0_108], %205 {strides = array<i32>} : memref<1x4x2x128xf32, #tpu.memory_space<vmem>>, vector<1x1x2x128xf32>,
    return
  }
  func.func @transform_0(%arg0: i32, %arg1: i32) -> (i32, i32) {
    %c0_i32 = arith.constant 0 : i32
    %c0_i32_0 = arith.constant 0 : i32
    %c0_i32_1 = arith.constant 0 : i32
    return %c0_i32, %c0_i32_0 : i32, i32
  }
  func.func @transform_1(%arg0: i32, %arg1: i32) -> i32 {
    %c0_i32 = arith.constant 0 : i32
    %c0_i32_0 = arith.constant 0 : i32
    return %c0_i32 : i32
  }
  func.func @transform_2(%arg0: i32, %arg1: i32) -> (i32, i32) {
    %c0_i32 = arith.constant 0 : i32
    %c0_i32_0 = arith.constant 0 : i32
    %c0_i32_1 = arith.constant 0 : i32
    return %c0_i32, %c0_i32_0 : i32, i32
  }
  func.func @transform_3(%arg0: i32, %arg1: i32) -> i32 {
    %c0_i32 = arith.constant 0 : i32
    %c0_i32_0 = arith.constant 0 : i32
    return %c0_i32 : i32
  }
  func.func @transform_4(%arg0: i32, %arg1: i32) -> i32 {
    %c0_i32 = arith.constant 0 : i32
    %c0_i32_0 = arith.constant 0 : i32
    return %c0_i32 : i32
  }
  func.func @transform_5(%arg0: i32, %arg1: i32) -> (i32, i32, i32, i32) {
    %c0_i32 = arith.constant 0 : i32
    %c0_i32_0 = arith.constant 0 : i32
    %c0_i32_1 = arith.constant 0 : i32
    return %arg0, %c0_i32, %arg1, %c0_i32_0 : i32, i32, i32, i32
  }
  func.func @transform_6(%arg0: i32, %arg1: i32) -> (i32, i32, i32, i32) {
    %c0_i32 = arith.constant 0 : i32
    %c0_i32_0 = arith.constant 0 : i32
    %c0_i32_1 = arith.constant 0 : i32
    return %arg0, %c0_i32, %arg1, %c0_i32_0 : i32, i32, i32, i32
  }
}

</mosaic_0001>

<bundles_post_ra>
// kernel: residual_branch_forward.1
= control target key start
LH: loop header
LB: loop body
LE: loop exit
PB: predicated region body
PF: predicated region fallthrough
CT: control target
= control target key end

     0   :  { %11 = vsyncpa [#allocation3], 0  ;;  %s1228_s0 = inlined_call_operand.vmem [shape: f32[4,4], index: 0, kind: input, shape index: {}]   ;;  %s1229_s1 = inlined_call_operand.vmem [shape: f32[4], index: 1, kind: input, shape index: {}]   ;;  %s1230_s2 = inlined_call_operand.vmem [shape: f32[4,4], index: 2, kind: input, shape index: {}]   ;;  %s1231_s3 = inlined_call_operand.vmem [shape: f32[4], index: 3, kind: input, shape index: {}]   ;;  %s1232_s4 = inlined_call_operand.vmem [shape: f32[2], index: 4, kind: input, shape index: {}]   ;;  %s1233_s5 = inlined_call_operand.vmem [shape: f32[2,4,2,128], index: 5, kind: input, shape index: {}]   ;;  %s1234_s6 = inlined_call_operand.vmem [shape: f32[2,4,2,128], index: 6, kind: output, shape index: {}]  }
   0x1   :  { %12 = vsyncpa [#allocation5], 0 }
   0x2   :  { %13 = vsyncpa [#allocation8], 0  ;;  %s959_s21 = smov 0   ;;  %s961_s22 = smov 0  }
   0x3   :  { %s963_s23 = smov 0  }
   0x4 LB: > { %s221_s26 = sshll.u32 %s1229_s1, 4  ;;  %s667_s27 = sadd.s32 4294967295, %s917_s23   ;;  %s917_s23 = sphi %s963_s23, %s19_s23   ;;  %s913_s22 = sphi %s961_s22, %s1247_s22   ;;  %s909_s21 = sphi %s959_s21, %s1246_s21   ;;  %s222_s26 = int_to_ptr.vmem [resolvable:$true] %s221_s26 }
   0x5   : > { %p669_p0 = scmp.ge.s32.totalorder %s917_s23, 1  ;;  %p197_p1 = scmp.lt.s32.totalorder %s917_s23, 3 }
   0x6   : > { %p980_p2 = scmp.eq.s32.totalorder %s667_s27, 0  ;;  %s243_s8 = sshll.u32 %s1231_s3, 4  ;;  %s244_s8 = int_to_ptr.vmem [resolvable:$true] %s243_s8 }
   0x7   : > { %p984_p3 = pnand %p669_p0, %p197_p1  ;;  %s31_s10 = sadd.s32 1, %s913_s22 }
   0x8   : > { %s1238_s28 = scalar_select %p980_p2, 1, 0 }
   0x9   : > { %s1239_s29 = scalar_select %p984_p3, 1, 0 }
   0xa   : > { %p753_p4 = pneg %p984_p3  ;;  %s210_s13 = sshll.u32 %s1228_s0, 4  ;;  %s211_s13 = int_to_ptr.vmem [resolvable:$true] %s210_s13 }
   0xb   : > { %p1003_p6 = scmp.ge.s32.totalorder %s31_s10, 2  ;;  %s808_s15 = scalar_lea.vmem %s222_s26, 16 }
   0xc   : > { %p995_p5 = pnand %p980_p2, %p753_p4  ;;  %p809_p7 = scmp.ne.s32.totalorder %s222_s26, %s808_s15 }
   0xd   : > { %s1241_s14 = scalar_select %p1003_p6, 1, 0 }
   0xe   : > { %p1009_p8 = pneg %p995_p5  ;;  %p816_p11 = scmp.lt.s32.totalorder %s222_s26, %s222_s26 }
   0xf   : > { %p817_p12 = scmp.lt.s32.totalorder %s808_s15, %s808_s15 }
  0x10   : > { %p811_p9 = pnand %p1009_p8, %p809_p7 }
  0x11   : > { %p818_p13 = por %p817_p12, %p816_p11 }
  0x12   : > { %p812_p10 = pneg %p811_p9 }
  0x14   : > { %p819_p0 = pnand %p818_p13, %p812_p10 }
  0x16   : > { %822 = shalt.err (!%p819_p0)
}
  0x17   : > { %s919_s17 = smov [#allocation4]   ;;  %s823_s18 = scalar_lea.vmem %s244_s8, 16 }
  0x18   : > { %759 = dma.vmem_to_smem (!%p995_p5), %s222_s26, 16, %s919_s17, [#allocation5]  }
  0x19   : > { %p824_p1 = scmp.ne.s32.totalorder %s244_s8, %s823_s18  ;;  %p831_p3 = scmp.lt.s32.totalorder %s244_s8, %s244_s8 }
  0x1a   : > { %p832_p6 = scmp.lt.s32.totalorder %s823_s18, %s823_s18 }
  0x1b   : > { %p826_p4 = pnand %p824_p1, %p1009_p8 }
  0x1c   : > { %p833_p7 = por %p832_p6, %p831_p3 }
  0x1d   : > { %p827_p2 = pneg %p826_p4 }
  0x1f   : > { %p834_p9 = pnand %p833_p7, %p827_p2 }
  0x21   : > { %837 = shalt.err (!%p834_p9)
}
  0x22   : > { %s920_s19 = smov [#allocation7]   ;;  %p1243_p10 = scmp.ne.s32.totalorder %s1241_s14, 0 }
  0x23   : > { %765 = dma.vmem_to_smem (!%p995_p5), %s244_s8, 16, %s920_s19, [#allocation8]  }
  0x24   : > { %s1249_s10 = smov (%p1243_p10, %s31_s10), 0  ;;  %s838_s20 = scalar_lea.vmem %s211_s13, 64 }
  0x25   : > { %p839_p11 = scmp.ne.s32.totalorder %s211_s13, %s838_s20  ;;  %p846_p0 = scmp.lt.s32.totalorder %s211_s13, %s211_s13 }
  0x26   : > { %p847_p1 = scmp.lt.s32.totalorder %s838_s20, %s838_s20 }
  0x27   : > { %p841_p12 = pnand %p839_p11, %p1009_p8 }
  0x28   : > { %p848_p3 = por %p847_p1, %p846_p0 }
  0x29   : > { %p842_p13 = pneg %p841_p12 }
  0x2b   : > { %p849_p2 = pnand %p848_p3, %p842_p13 }
  0x2d   : > { %852 = shalt.err (!%p849_p2)
}
  0x2e   : > { %s921_s24 = smov [#allocation2]   ;;  %s232_s27 = sshll.u32 %s1230_s2, 4  ;;  %s233_s27 = int_to_ptr.vmem [resolvable:$true] %s232_s27 }
  0x2f   : > { %756 = dma.vmem_to_smem (!%p995_p5), %s211_s13, 64, %s921_s24, [#allocation3]  }
  0x30   : > { %s254_s8 = sshll.u32 %s1232_s4, 4  ;;  %s853_s11 = scalar_lea.vmem %s233_s27, 64  ;;  %s255_s8 = int_to_ptr.vmem [resolvable:$true] %s254_s8 }
  0x31   : > { %p854_p6 = scmp.ne.s32.totalorder %s233_s27, %s853_s11  ;;  %p861_p9 = scmp.lt.s32.totalorder %s233_s27, %s233_s27 }
  0x32   : > { %p862_p10 = scmp.lt.s32.totalorder %s853_s11, %s853_s11 }
  0x33   : > { %p856_p4 = pnand %p854_p6, %p1009_p8 }
  0x34   : > { %p863_p11 = por %p862_p10, %p861_p9 }
  0x35   : > { %p857_p7 = pneg %p856_p4 }
  0x37   : > { %p864_p12 = pnand %p863_p11, %p857_p7 }
  0x39   : > { %867 = shalt.err (!%p864_p12)
}
  0x3a   : > { %s922_s12 = smov [#allocation6]   ;;  %s868_s13 = scalar_lea.vmem %s255_s8, 16 }
  0x3b   : > { %762 = dma.vmem_to_smem (!%p995_p5), %s233_s27, 64, %s922_s12, [#allocation5]  }
  0x3c   : > { %p869_p13 = scmp.ne.s32.totalorder %s255_s8, %s868_s13  ;;  %p876_p3 = scmp.lt.s32.totalorder %s255_s8, %s255_s8 }
  0x3d   : > { %p877_p2 = scmp.lt.s32.totalorder %s868_s13, %s868_s13 }
  0x3e   : > { %p871_p0 = pnand %p869_p13, %p1009_p8 }
  0x3f   : > { %p878_p6 = por %p877_p2, %p876_p3 }
  0x40   : > { %p872_p1 = pneg %p871_p0 }
  0x42   : > { %p879_p4 = pnand %p878_p6, %p872_p1 }
  0x44   : > { %882 = shalt.err (!%p879_p4)
}
  0x45   : > { %s923_s14 = smov [#allocation9]   ;;  %p1244_p7 = scmp.ne.s32.totalorder %s1239_s29, 0 }
  0x46   : > { %768 = dma.vmem_to_smem (!%p995_p5), %s255_s8, 16, %s923_s14, [#allocation8]  }
  0x47   : > { %278 = sbr.rel (%p1244_p7) target bundleno = 134 (0x86), region = 44  ;;  %p1245_p9 = scmp.ne.s32.totalorder (!%p1244_p7), %s1238_s28, 0 }
  0x4e   : > { %896 = dma.done.wait (%p1245_p9), [#allocation3], 64  }
  0x4f   : > { %898 = vsyncadd (%p1245_p9), [#allocation3], 4294967232 }
  0x50   : > { %900 = dma.done.wait (%p1245_p9), [#allocation5], 80  }
  0x51   : > { %902 = vsyncadd (%p1245_p9), [#allocation5], 4294967216 }
  0x52   : > { %904 = dma.done.wait (%p1245_p9), [#allocation8], 32  }
  0x53   : > { %906 = vsyncadd (%p1245_p9), [#allocation8], 4294967264 }
  0x54   : > { %300 = sfence }
  0x55   : > { %p331_p5 = scmp.lt.s32.totalorder %s909_s21, 1  ;;  %s356_s29 = sld [smem:[#allocation2]] }
  0x56   : > { %s359_s9 = sld [smem:[#allocation4]]  ;;  %s690_s15 = sld [smem:[#allocation2 + $0x1]] }
  0x57   : > { %s1251_s21 = smov (!%p331_p5, %s909_s21), 1  ;;  %s691_s17 = sld [smem:[#allocation2 + $0x2]] }
  0x58   : > { %s731_s16 = sshll.u32 %s1251_s21, 3  ;;  %s347_s28 = sld [smem:[#allocation9]] }
  0x59   : > { %s338_s20 = scalar_lea.vmem %s1233_s5, %s731_s16  ;;  %s1067_s24 = sld [smem:[#allocation9 + $0x1]] }
  0x5a   : > { %v1069_v0 = vld [vmem:[%s338_s20] sm:$0x3]  ;;  %v1071_v1 = vld [vmem:[%s338_s20 + $0x2] sm:$0x3]  ;;  %s692_s25 = sld [smem:[#allocation2 + $0x3]]  ;;  %s693_s26 = sld [smem:[#allocation2 + $0x80]] }
  0x5b   : > { %v357_v2 = vstv %s356_s29  ;;  %v1073_v3 = vld [vmem:[%s338_s20 + $0x4] sm:$0x3]  ;;  %s1076_s27 = sld [smem:[#allocation4 + $0x1]]  ;;  %s1080_s7 = sld [smem:[#allocation2 + $0x82]]  ;;  %v1089_v10 = vld [vmem:[%s338_s20 + $0x6] sm:$0x3] }
  0x5c   : > { %v358_v4 = vmul.f32 %v357_v2, %v1069_v0  ;;  %s1078_s30 = sld [smem:[#allocation2 + $0x81]]  ;;  %v360_v5 = vstv %s359_s9  ;;  %v363_v6 = vstv %s690_s15  ;;  %s1082_s8 = sld [smem:[#allocation2 + $0x83]] }
  0x5d   : > { %v364_v8 = vmul.f32 %v1071_v1, %v363_v6  ;;  %v367_v9 = vstv %s691_s17  ;;  %s1085_s11 = sld [smem:[#allocation2 + $0x100]]  ;;  %s1087_s12 = sld [smem:[#allocation4 + $0x2]] }
  0x5e   : > { %v361_v7 = vadd.f32 %v360_v5, %v358_v4  ;;  %v368_v11 = vmul.f32 %v1073_v3, %v367_v9  ;;  %s1092_s13 = sld [smem:[#allocation2 + $0x101]]  ;;  %s1094_s14 = sld [smem:[#allocation2 + $0x102]]  ;;  %v1100_v14 = vstv %s347_s28 }
  0x5f   : > { %s1096_s29 = sld [smem:[#allocation2 + $0x103]]  ;;  %s1098_s9 = sld [smem:[#allocation2 + $0x180]]  ;;  %v1119_v23 = vstv %s1067_s24 }
  0x60   : > { %v365_v12 = vadd.f32 %v364_v8, %v361_v7  ;;  %v371_v13 = vstv %s692_s25  ;;  %v379_v15 = vstv %s693_s26  ;;  %s1102_s15 = sld [smem:[#allocation4 + $0x3]]  ;;  %s1104_s17 = sld [smem:[#allocation2 + $0x181]] }
  0x61   : > { %v372_v17 = vmul.f32 %v1089_v10, %v371_v13  ;;  %v380_v18 = vmul.f32 %v379_v15, %v1069_v0  ;;  %v382_v19 = vstv %s1076_s27  ;;  %s1109_s18 = sld [smem:[#allocation2 + $0x182]]  ;;  %v389_v21 = vstv %s1080_s7  ;;  %s1114_s19 = sld [smem:[#allocation2 + $0x183]] }
  0x62   : > { %v369_v16 = vadd.f32 %v368_v11, %v365_v12  ;;  %v385_v20 = vstv %s1078_s30  ;;  %v393_v22 = vstv %s1082_s8  ;;  %s1116_s20 = sld [smem:[#allocation6]]  ;;  %v390_v27 = vmul.f32 %v1073_v3, %v389_v21  ;;  %s1129_s25 = sld [smem:[#allocation6 + $0x1]] }
  0x63   : > { %v383_v25 = vadd.f32 %v382_v19, %v380_v18  ;;  %v386_v26 = vmul.f32 %v1071_v1, %v385_v20  ;;  %v394_v28 = vmul.f32 %v1089_v10, %v393_v22  ;;  %v400_v29 = vstv %s1085_s11  ;;  %s1127_s28 = sld [smem:[#allocation7]]  ;;  %s1133_s24 = sld [smem:[#allocation6 + $0x2]] }
  0x64   : > { %v373_v24 = vadd.f32 %v372_v17, %v369_v16  ;;  %v403_v30 = vstv %s1087_s12  ;;  %v406_v31 = vstv %s1092_s13  ;;  %v401_v34 = vmul.f32 %v400_v29, %v1069_v0  ;;  %s1135_s26 = sld [smem:[#allocation6 + $0x3]]  ;;  %s1141_s27 = sld [smem:[#allocation6 + $0x80]] }
  0x65   : > { %v387_v33 = vadd.f32 %v386_v26, %v383_v25  ;;  %v407_v35 = vmul.f32 %v1071_v1, %v406_v31  ;;  %v410_v36 = vstv %s1094_s14  ;;  %v414_v37 = vstv %s1096_s29  ;;  %s1146_s30 = sld [smem:[#allocation7 + $0x1]]  ;;  %s1154_s8 = sld [smem:[#allocation6 + $0x82]] }
  0x66   : > { %vm374_vm0 = vcmp.gt.f32.partialorder %v373_v24, 0.0  ;;  %v376_v32 = vmul.f32 %v1100_v14, %v373_v24  ;;  %v421_v38 = vstv %s1098_s9  ;;  %v404_v41 = vadd.f32 %v403_v30, %v401_v34  ;;  %s1152_s7 = sld [smem:[#allocation6 + $0x81]]  ;;  %s1158_s11 = sld [smem:[#allocation6 + $0x83]] }
  0x67   : > { %v391_v40 = vadd.f32 %v390_v27, %v387_v33  ;;  %v411_v42 = vmul.f32 %v1073_v3, %v410_v36  ;;  %v415_v43 = vmul.f32 %v1089_v10, %v414_v37  ;;  %v422_v44 = vmul.f32 %v421_v38, %v1069_v0  ;;  %s1163_s12 = sld [smem:[#allocation6 + $0x100]]  ;;  %s1167_s13 = sld [smem:[#allocation7 + $0x2]] }
  0x68   : > { %v1143_v39 = vsel %vm374_vm0, %v373_v24, %v376_v32  ;;  %v424_v45 = vstv %s1102_s15  ;;  %v427_v46 = vstv %s1104_s17  ;;  %v408_v48 = vadd.f32 %v407_v35, %v404_v41  ;;  %s1169_s14 = sld [smem:[#allocation6 + $0x101]]  ;;  %s1176_s29 = sld [smem:[#allocation6 + $0x102]] }
  0x69   : > { %v395_v47 = vadd.f32 %v394_v28, %v391_v40  ;;  %v428_v49 = vmul.f32 %v1071_v1, %v427_v46  ;;  %v431_v50 = vstv %s1109_s18  ;;  %v425_v51 = vadd.f32 %v424_v45, %v422_v44  ;;  %s1179_s9 = sld [smem:[#allocation6 + $0x103]]  ;;  %s1181_s15 = sld [smem:[#allocation6 + $0x180]] }
  0x6a   : > { %v432_v52 = vmul.f32 %v1073_v3, %v431_v50  ;;  %v435_v53 = vstv %s1114_s19  ;;  %v442_v54 = vstv %s1116_s20  ;;  %v412_v56 = vadd.f32 %v411_v42, %v408_v48  ;;  %s1186_s17 = sld [smem:[#allocation7 + $0x3]]  ;;  %s1190_s18 = sld [smem:[#allocation6 + $0x181]] }
  0x6b   : > { %vm396_vm1 = vcmp.gt.f32.partialorder %v395_v47, 0.0  ;;  %v397_v55 = vmul.f32 %v395_v47, %v1100_v14  ;;  %v436_v57 = vmul.f32 %v1089_v10, %v435_v53  ;;  %v429_v58 = vadd.f32 %v428_v49, %v425_v51  ;;  %s1192_s19 = sld [smem:[#allocation6 + $0x182]]  ;;  %s1199_s20 = sld [smem:[#allocation6 + $0x183]] }
  0x6c   : > { %v443_v59 = vmul.f32 %v442_v54, %v1143_v39  ;;  %v445_v60 = vstv %s1127_s28  ;;  %v448_v61 = vstv %s1129_s25  ;;  %v416_v63 = vadd.f32 %v415_v43, %v412_v56 }
  0x6d   : > { %v398_v62 = vsel %vm396_vm1, %v395_v47, %v397_v55  ;;  %v452_v0 = vstv %s1133_s24  ;;  %v456_v1 = vstv %s1135_s26  ;;  %v433_v2 = vadd.f32 %v432_v52, %v429_v58  ;;  %s346_s24 = scalar_lea.vmem %s1234_s6, %s731_s16 }
  0x6e   : > { %v446_v3 = vadd.f32 %v445_v60, %v443_v59  ;;  %v449_v4 = vmul.f32 %v448_v61, %v398_v62  ;;  %v465_v5 = vstv %s1141_s27  ;;  %vm417_vm2 = vcmp.gt.f32.partialorder %v416_v63, 0.0 }
  0x6f   : > { %v418_v6 = vmul.f32 %v416_v63, %v1100_v14  ;;  %v466_v7 = vmul.f32 %v465_v5, %v1143_v39  ;;  %v468_v8 = vstv %s1146_s30  ;;  %v437_v9 = vadd.f32 %v436_v57, %v433_v2 }
  0x70   : > { %v450_v10 = vadd.f32 %v449_v4, %v446_v3  ;;  %v471_v11 = vstv %s1152_s7  ;;  %v475_v12 = vstv %s1154_s8  ;;  %v479_v17 = vstv %s1158_s11 }
  0x71   : > { %v419_v13 = vsel %vm417_vm2, %v416_v63, %v418_v6  ;;  %v469_v15 = vadd.f32 %v468_v8, %v466_v7  ;;  %v472_v16 = vmul.f32 %v471_v11, %v398_v62  ;;  %vm438_vm3 = vcmp.gt.f32.partialorder %v437_v9, 0.0 }
  0x72   : > { %v439_v18 = vmul.f32 %v437_v9, %v1100_v14  ;;  %v453_v19 = vmul.f32 %v452_v0, %v419_v13  ;;  %v476_v20 = vmul.f32 %v475_v12, %v419_v13  ;;  %v488_v22 = vstv %s1163_s12 }
  0x73   : > { %v473_v21 = vadd.f32 %v472_v16, %v469_v15  ;;  %v491_v24 = vstv %s1167_s13  ;;  %v494_v25 = vstv %s1169_s14  ;;  %v489_v28 = vmul.f32 %v488_v22, %v1143_v39 }
  0x74   : > { %v440_v26 = vsel %vm438_vm3, %v437_v9, %v439_v18  ;;  %v454_v27 = vadd.f32 %v453_v19, %v450_v10  ;;  %v495_v29 = vmul.f32 %v494_v25, %v398_v62  ;;  %v498_v32 = vstv %s1176_s29 }
  0x75   : > { %v457_v30 = vmul.f32 %v456_v1, %v440_v26  ;;  %v477_v14 = vadd.f32 %v476_v20, %v473_v21  ;;  %v480_v31 = vmul.f32 %v479_v17, %v440_v26  ;;  %v492_v33 = vadd.f32 %v491_v24, %v489_v28 }
  0x76   : > { %v499_v34 = vmul.f32 %v498_v32, %v419_v13  ;;  %v502_v35 = vstv %s1179_s9  ;;  %v511_v36 = vstv %s1181_s15  ;;  %v514_v43 = vstv %s1186_s17 }
  0x77   : > { %v458_v37 = vadd.f32 %v457_v30, %v454_v27  ;;  %v481_v38 = vadd.f32 %v480_v31, %v477_v14  ;;  %v503_v40 = vmul.f32 %v502_v35, %v440_v26  ;;  %v512_v41 = vmul.f32 %v511_v36, %v1143_v39 }
  0x78   : > { %v496_v42 = vadd.f32 %v495_v29, %v492_v33  ;;  %v517_v44 = vstv %s1190_s18  ;;  %v521_v45 = vstv %s1192_s19  ;;  %v525_v53 = vstv %s1199_s20 }
  0x79   : > { %vm459_vm4 = vcmp.gt.f32.partialorder %v458_v37, 0.0  ;;  %v461_v46 = vmul.f32 %v1119_v23, %v458_v37  ;;  %vm482_vm5 = vcmp.gt.f32.partialorder %v481_v38, 0.0  ;;  %v483_v47 = vmul.f32 %v481_v38, %v1119_v23 }
  0x7a   : > { %v500_v48 = vadd.f32 %v499_v34, %v496_v42  ;;  %v515_v49 = vadd.f32 %v514_v43, %v512_v41  ;;  %v518_v50 = vmul.f32 %v517_v44, %v398_v62  ;;  %v522_v39 = vmul.f32 %v521_v45, %v419_v13 }
  0x7b   : > { %v462_v51 = vsel %vm459_vm4, %v458_v37, %v461_v46  ;;  %v484_v52 = vsel %vm482_vm5, %v481_v38, %v483_v47  ;;  %v526_v56 = vmul.f32 %v525_v53, %v440_v26 }
  0x7c   : > { %463 = vst [vmem:[%s346_s24] sm:$0x3] %v462_v51  ;;  %716 = vst [vmem:[%s346_s24 + $0x2] sm:$0x3] %v484_v52  ;;  %v504_v54 = vadd.f32 %v503_v40, %v500_v48  ;;  %v519_v55 = vadd.f32 %v518_v50, %v515_v49 }
  0x7e   : > { %vm505_vm6 = vcmp.gt.f32.partialorder %v504_v54, 0.0  ;;  %v506_v57 = vmul.f32 %v504_v54, %v1119_v23  ;;  %v523_v58 = vadd.f32 %v522_v39, %v519_v55 }
  0x80   : > { %v507_v59 = vsel %vm505_vm6, %v504_v54, %v506_v57  ;;  %v527_v60 = vadd.f32 %v526_v56, %v523_v58 }
  0x81   : > { %722 = vst [vmem:[%s346_s24 + $0x4] sm:$0x3] %v507_v59 }
  0x82   : > { %vm528_vm7 = vcmp.gt.f32.partialorder %v527_v60, 0.0  ;;  %v529_v61 = vmul.f32 %v527_v60, %v1119_v23 }
  0x84   : > { %v530_v62 = vsel %vm528_vm7, %v527_v60, %v529_v61 }
  0x85   : > { %728 = vst [vmem:[%s346_s24 + $0x6] sm:$0x3] %v530_v62 }
  0x86 PF: > { %s19_s23 = sadd.s32 1, %s917_s23   ;;  %s1246_s21 = smov %s913_s22 }
  0x87   : > { %p16_p8 = scmp.ge.s32.totalorder %s19_s23, 4   ;;  %s1247_s22 = smov %s1249_s10 }
  0x89   :  { %18 = sbr.rel (!%p16_p8) target bundleno = 4 (0x4), region = 101 }
  0x90   :  { %560 = vsyncpa [#allocation3], 1 }
  0x91   :  { %562 = vsyncpa [#allocation3 + $0x1], 1 }
  0x92   :  { %563 = vsyncpa [#allocation5], 1 }
  0x93   :  { %564 = vsyncpa [#allocation8], 1 }

</bundles_post_ra>
